<compile_context>
chip_gen: v7x
topology: tpu7x:2x2x1
jax: 0.10.0
libtpu: 0.0.40
codegen_flags: <defaults>
</compile_context>

<pallas_src>
import functools

import jax
import jax.numpy as jnp
from jax.experimental import pallas as pl
from jax.experimental.pallas import tpu as pltpu


def _round_up(x, m):
    return ((x + m - 1) // m) * m


def angle_resnet_kernel(
    s_ref, si_ref,                        # [TM, c_s] f32 row tiles (s, s_initial)
    w_in_ref, w_init_ref, b_proj_ref,     # [c_s, c] bf16 x2, [1, c] f32 (b_in + b_init)
    w11_ref, b11_ref, w12_ref, b12_ref,   # layer 1
    w21_ref, b21_ref, w22_ref, b22_ref,   # layer 2
    w_out_ref, b_out_ref,                 # [c, out_pad] bf16, [1, out_pad] f32 (lane padded)
    out_ref,                              # [TM, out_pad] bf16
):
    f32 = jnp.float32
    bf16 = jnp.bfloat16

    def mm(x_bf16, w_ref):
        # bf16 MXU operands, f32 accumulation.
        return jnp.dot(x_bf16, w_ref[...], preferred_element_type=f32)

    # ReLU in bf16 (exact); feeds the MXU directly without an f32 round-trip.
    s = jnp.maximum(s_ref[...].astype(bf16), 0.0)
    si = jnp.maximum(si_ref[...].astype(bf16), 0.0)

    # a = linear_in(relu(s)) + linear_initial(relu(s_initial)); f32 accumulator.
    a = mm(s, w_in_ref) + mm(si, w_init_ref) + b_proj_ref[...]

    # ResNet layer 1: a = a + linear_2(relu(linear_1(relu(a))))
    h = jnp.maximum((mm(jnp.maximum(a.astype(bf16), 0.0), w11_ref)
                     + b11_ref[...]).astype(bf16), 0.0)
    a = a + mm(h, w12_ref) + b12_ref[...]

    # ResNet layer 2
    h = jnp.maximum((mm(jnp.maximum(a.astype(bf16), 0.0), w21_ref)
                     + b21_ref[...]).astype(bf16), 0.0)
    a = a + mm(h, w22_ref) + b22_ref[...]

    # alpha = linear_out(relu(a))  (padded columns of w_out/b_out are zero)
    alpha = mm(jnp.maximum(a.astype(bf16), 0.0), w_out_ref) + b_out_ref[...]
    out_ref[...] = alpha.astype(out_ref.dtype)


def init_params(key, c_s, c, n_torsion_angles=7):
    """Deterministic synthetic parameters.

    Weights stored pre-transposed as [in_features, out_features] in bf16
    (HBM-bandwidth-bound workload); biases stored as [1, out_features] in f32.
    """
    ks = jax.random.split(key, 12)

    def lin(kw, kb, fan_in, fan_out):
        w = (jax.random.normal(kw, (fan_in, fan_out), jnp.float32) * 0.1
             ).astype(jnp.bfloat16)
        b = jax.random.normal(kb, (1, fan_out), jnp.float32) * 0.05
        return w, b

    w_in, b_in = lin(ks[0], ks[1], c_s, c)
    w_init, b_init = lin(ks[2], ks[3], c_s, c)
    w11, b11 = lin(ks[4], ks[5], c, c)
    w12, b12 = lin(ks[6], ks[7], c, c)
    w21, b21 = lin(ks[8], ks[9], c, c)
    w22, b22 = lin(ks[10], ks[11], c, c)
    k_out = jax.random.fold_in(key, 999)
    w_out, b_out = lin(
        jax.random.fold_in(k_out, 0), jax.random.fold_in(k_out, 1),
        c, 2 * n_torsion_angles,
    )
    return dict(
        w_in=w_in, b_in=b_in, w_init=w_init, b_init=b_init,
        w11=w11, b11=b11, w12=w12, b12=b12,
        w21=w21, b21=b21, w22=w22, b22=b22,
        w_out=w_out, b_out=b_out,
    )


@functools.partial(jax.jit, static_argnames=("n_torsion_angles",))
def angle_resnet_forward(s, s_initial, params, n_torsion_angles=7):
    assert s.shape == s_initial.shape
    lead_shape = s.shape[:-1]
    c_s = s.shape[-1]
    c = params["w11"].shape[0]
    out_dim = 2 * n_torsion_angles
    out_pad = _round_up(out_dim, 128)      # lane-dense output width

    n_rows = 1
    for d in lead_shape:
        n_rows *= d

    # Row tile: multiple of 16 (bf16 output sublane packing), capped at 512
    # (pipelined roofline saturates there), and sized so the grid has >=2
    # steps whenever possible (double-buffering overlap + v7x megacore) while
    # minimizing row padding.  VMEM stays far under every scoped default.
    row_align = 16
    if n_rows <= row_align:
        tm = row_align
    else:
        tm = min(512, _round_up(-(-n_rows // 2), row_align))
    n_pad = _round_up(n_rows, tm)
    grid = (pl.cdiv(n_pad, tm),)

    # Stream s / s_initial directly (f32, no concat/cast copy in HBM).
    s2 = s.reshape(n_rows, c_s)
    si2 = s_initial.reshape(n_rows, c_s)
    if n_pad != n_rows:
        pad = ((0, n_pad - n_rows), (0, 0))
        s2 = jnp.pad(s2, pad)
        si2 = jnp.pad(si2, pad)

    # Fused input-projection bias + lane-padded output projection (tiny ops).
    b_proj = params["b_in"] + params["b_init"]                             # [1, c]
    w_out = jnp.pad(params["w_out"], ((0, 0), (0, out_pad - out_dim)))     # [c, out_pad]
    b_out = jnp.pad(params["b_out"], ((0, 0), (0, out_pad - out_dim)))     # [1, out_pad]

    consts = (
        params["w_in"], params["w_init"], b_proj,
        params["w11"], params["b11"], params["w12"], params["b12"],
        params["w21"], params["b21"], params["w22"], params["b22"],
        w_out, b_out,
    )

    def const_spec(a):
        # Full-array block, same index every grid step -> stays resident in VMEM.
        return pl.BlockSpec(a.shape, lambda i: (0, 0))

    in_specs = [
        pl.BlockSpec((tm, c_s), lambda i: (i, 0)),   # s row tile
        pl.BlockSpec((tm, c_s), lambda i: (i, 0)),   # s_initial row tile
    ]
    in_specs += [const_spec(a) for a in consts]
    out_spec = pl.BlockSpec((tm, out_pad), lambda i: (i, 0))

    flops = 2 * n_pad * (2 * c_s * c + 4 * c * c + c * out_pad)
    weight_bytes = sum(int(a.size) * a.dtype.itemsize for a in consts)
    bytes_accessed = n_pad * (2 * c_s * 4 + out_pad * 2) + weight_bytes

    alpha_pad = pl.pallas_call(
        angle_resnet_kernel,
        out_shape=jax.ShapeDtypeStruct((n_pad, out_pad), jnp.bfloat16),
        grid=grid,
        in_specs=in_specs,
        out_specs=out_spec,
        compiler_params=pltpu.CompilerParams(dimension_semantics=("parallel",)),
        cost_estimate=pl.CostEstimate(
            flops=flops, transcendentals=0, bytes_accessed=bytes_accessed),
    )(s2, si2, *consts)

    # Slice the 14 useful lanes and give downstream f32 (tiny post-op).
    alpha = alpha_pad[:n_rows, :out_dim].astype(jnp.float32)
    return alpha.reshape(*lead_shape, n_torsion_angles, 2)


def angle_resnet_reference(s, s_initial, params, n_torsion_angles=7):
    """Pure-JAX reference mirroring the kernel numerics (bf16 MXU operands,
    f32 accumulation, bf16 output rounding) and the PyTorch module semantics."""
    f32, bf16 = jnp.float32, jnp.bfloat16

    def mm(x, w):
        return jnp.dot(x.astype(bf16), w, preferred_element_type=f32)

    s = jnp.maximum(s, 0.0)
    si = jnp.maximum(s_initial, 0.0)
    a = (mm(s, params["w_in"]) + mm(si, params["w_init"])
         + params["b_in"][0] + params["b_init"][0])
    for w1, b1, w2, b2 in (
        (params["w11"], params["b11"], params["w12"], params["b12"]),
        (params["w21"], params["b21"], params["w22"], params["b22"]),
    ):
        h = jnp.maximum(mm(jnp.maximum(a, 0.0), w1) + b1[0], 0.0)
        a = a + mm(h, w2) + b2[0]
    alpha = mm(jnp.maximum(a, 0.0), params["w_out"]) + params["b_out"][0]
    alpha = alpha.astype(bf16).astype(f32)   # kernel emits bf16 output
    return alpha.reshape(*alpha.shape[:-1], n_torsion_angles, 2)


if __name__ == "__main__":
    key = jax.random.PRNGKey(0)
    k_s, k_si, k_p = jax.random.split(key, 3)

    batch, seq = 2, 16
    c_s, c, n_torsion = 32, 32, 7

    s = jax.random.normal(k_s, (batch, seq, c_s), jnp.float32)
    s_initial = jax.random.normal(k_si, (batch, seq, c_s), jnp.float32)
    params = init_params(k_p, c_s, c, n_torsion)

    alpha = angle_resnet_forward(s, s_initial, params, n_torsion_angles=n_torsion)
    alpha = jax.block_until_ready(alpha)

    assert alpha.shape == (batch, seq, n_torsion, 2), alpha.shape

    ref = angle_resnet_reference(s, s_initial, params, n_torsion_angles=n_torsion)
    assert jnp.allclose(alpha, ref, atol=5e-3, rtol=5e-3), (
        "mismatch vs reference: max abs err = "
        f"{float(jnp.max(jnp.abs(alpha - ref)))}")

    print("KERNEL_OK")
</pallas_src>

<mosaic_0001>
module attributes {stable_mosaic.version = 11 : i64} {
  func.func @angle_resnet_kernel(%arg0: i32, %arg1: memref<16x32xf32, #tpu.memory_space<vmem>>, %arg2: memref<16x32xf32, #tpu.memory_space<vmem>>, %arg3: memref<32x32xbf16, #tpu.memory_space<vmem>>, %arg4: memref<32x32xbf16, #tpu.memory_space<vmem>>, %arg5: memref<1x32xf32, #tpu.memory_space<vmem>>, %arg6: memref<32x32xbf16, #tpu.memory_space<vmem>>, %arg7: memref<1x32xf32, #tpu.memory_space<vmem>>, %arg8: memref<32x32xbf16, #tpu.memory_space<vmem>>, %arg9: memref<1x32xf32, #tpu.memory_space<vmem>>, %arg10: memref<32x32xbf16, #tpu.memory_space<vmem>>, %arg11: memref<1x32xf32, #tpu.memory_space<vmem>>, %arg12: memref<32x32xbf16, #tpu.memory_space<vmem>>, %arg13: memref<1x32xf32, #tpu.memory_space<vmem>>, %arg14: memref<32x128xbf16, #tpu.memory_space<vmem>>, %arg15: memref<1x128xf32, #tpu.memory_space<vmem>>, %arg16: memref<16x128xbf16, #tpu.memory_space<vmem>>) attributes {dimension_semantics = [#tpu.dimension_semantics<parallel>], iteration_bounds = array<i64: 2>, scalar_prefetch = 0 : i64, scratch_operands = 0 : i64, tpu.core_type = #tpu.core_type<tc>, window_params = [{transform_indices = @transform_0, window_bounds = array<i64: 16, 32>}, {transform_indices = @transform_1, window_bounds = array<i64: 16, 32>}, {pipeline_mode = #tpu.pipeline_mode<synchronous>, transform_indices = @transform_2, window_bounds = array<i64: 32, 32>}, {pipeline_mode = #tpu.pipeline_mode<synchronous>, transform_indices = @transform_3, window_bounds = array<i64: 32, 32>}, {pipeline_mode = #tpu.pipeline_mode<synchronous>, transform_indices = @transform_4, window_bounds = array<i64: 1, 32>}, {pipeline_mode = #tpu.pipeline_mode<synchronous>, transform_indices = @transform_5, window_bounds = array<i64: 32, 32>}, {pipeline_mode = #tpu.pipeline_mode<synchronous>, transform_indices = @transform_6, window_bounds = array<i64: 1, 32>}, {pipeline_mode = #tpu.pipeline_mode<synchronous>, transform_indices = @transform_7, window_bounds = array<i64: 32, 32>}, {pipeline_mode = #tpu.pipeline_mode<synchronous>, transform_indices = @transform_8, window_bounds = array<i64: 1, 32>}, {pipeline_mode = #tpu.pipeline_mode<synchronous>, transform_indices = @transform_9, window_bounds = array<i64: 32, 32>}, {pipeline_mode = #tpu.pipeline_mode<synchronous>, transform_indices = @transform_10, window_bounds = array<i64: 1, 32>}, {pipeline_mode = #tpu.pipeline_mode<synchronous>, transform_indices = @transform_11, window_bounds = array<i64: 32, 32>}, {pipeline_mode = #tpu.pipeline_mode<synchronous>, transform_indices = @transform_12, window_bounds = array<i64: 1, 32>}, {pipeline_mode = #tpu.pipeline_mode<synchronous>, transform_indices = @transform_13, window_bounds = array<i64: 32, 128>}, {pipeline_mode = #tpu.pipeline_mode<synchronous>, transform_indices = @transform_14, window_bounds = array<i64: 1, 128>}, {transform_indices = @transform_15, window_bounds = array<i64: 16, 128>}]} {
    %c0 = arith.constant 0 : index
    %c0_0 = arith.constant 0 : index
    %0 = vector.load %arg1[%c0, %c0_0] : memref<16x32xf32, #tpu.memory_space<vmem>>, vector<16x32xf32>
    %1 = arith.truncf %0 : vector<16x32xf32> to vector<16x32xbf16>
    %cst = arith.constant 0.000000e+00 : bf16
    %2 = vector.broadcast %cst : bf16 to vector<16x32xbf16>
    %3 = arith.maximumf %1, %2 : vector<16x32xbf16>
    %c0_1 = arith.constant 0 : index
    %c0_2 = arith.constant 0 : index
    %4 = vector.load %arg2[%c0_1, %c0_2] : memref<16x32xf32, #tpu.memory_space<vmem>>, vector<16x32xf32>
    %5 = arith.truncf %4 : vector<16x32xf32> to vector<16x32xbf16>
    %cst_3 = arith.constant 0.000000e+00 : bf16
    %6 = vector.broadcast %cst_3 : bf16 to vector<16x32xbf16>
    %7 = arith.maximumf %5, %6 : vector<16x32xbf16>
    %c0_4 = arith.constant 0 : index
    %c0_5 = arith.constant 0 : index
    %8 = vector.load %arg3[%c0_4, %c0_5] : memref<32x32xbf16, #tpu.memory_space<vmem>>, vector<32x32xbf16>
    %cst_6 = arith.constant dense<0.000000e+00> : vector<16x32xf32>
    %9 = tpu.matmul %3, %8, %cst_6 {dimension_numbers = #tpu.dot_dimension_numbers<[1], [0], [0], [1], [0, 0, 1, 1], [], []>} : vector<16x32xbf16>, vector<32x32xbf16>, vector<16x32xf32> -> vector<16x32xf32>
    %c0_7 = arith.constant 0 : index
    %c0_8 = arith.constant 0 : index
    %10 = vector.load %arg4[%c0_7, %c0_8] : memref<32x32xbf16, #tpu.memory_space<vmem>>, vector<32x32xbf16>
    %cst_9 = arith.constant dense<0.000000e+00> : vector<16x32xf32>
    %11 = tpu.matmul %7, %10, %cst_9 {dimension_numbers = #tpu.dot_dimension_numbers<[1], [0], [0], [1], [0, 0, 1, 1], [], []>} : vector<16x32xbf16>, vector<32x32xbf16>, vector<16x32xf32> -> vector<16x32xf32>
    %12 = arith.addf %9, %11 : vector<16x32xf32>
    %c0_10 = arith.constant 0 : index
    %c0_11 = arith.constant 0 : index
    %13 = vector.load %arg5[%c0_10, %c0_11] : memref<1x32xf32, #tpu.memory_space<vmem>>, vector<1x32xf32>
    %14 = vector.broadcast %13 : vector<1x32xf32> to vector<16x32xf32>
    %15 = arith.addf %12, %14 : vector<16x32xf32>
    %16 = arith.truncf %15 : vector<16x32xf32> to vector<16x32xbf16>
    %cst_12 = arith.constant 0.000000e+00 : bf16
    %17 = vector.broadcast %cst_12 : bf16 to vector<16x32xbf16>
    %18 = arith.maximumf %16, %17 : vector<16x32xbf16>
    %c0_13 = arith.constant 0 : index
    %c0_14 = arith.constant 0 : index
    %19 = vector.load %arg6[%c0_13, %c0_14] : memref<32x32xbf16, #tpu.memory_space<vmem>>, vector<32x32xbf16>
    %cst_15 = arith.constant dense<0.000000e+00> : vector<16x32xf32>
    %20 = tpu.matmul %18, %19, %cst_15 {dimension_numbers = #tpu.dot_dimension_numbers<[1], [0], [0], [1], [0, 0, 1, 1], [], []>} : vector<16x32xbf16>, vector<32x32xbf16>, vector<16x32xf32> -> vector<16x32xf32>
    %c0_16 = arith.constant 0 : index
    %c0_17 = arith.constant 0 : index
    %21 = vector.load %arg7[%c0_16, %c0_17] : memref<1x32xf32, #tpu.memory_space<vmem>>, vector<1x32xf32>
    %22 = vector.broadcast %21 : vector<1x32xf32> to vector<16x32xf32>
    %23 = arith.addf %20, %22 : vector<16x32xf32>
    %24 = arith.truncf %23 : vector<16x32xf32> to vector<16x32xbf16>
    %cst_18 = arith.constant 0.000000e+00 : bf16
    %25 = vector.broadcast %cst_18 : bf16 to vector<16x32xbf16>
    %26 = arith.maximumf %24, %25 : vector<16x32xbf16>
    %c0_19 = arith.constant 0 : index
    %c0_20 = arith.constant 0 : index
    %27 = vector.load %arg8[%c0_19, %c0_20] : memref<32x32xbf16, #tpu.memory_space<vmem>>, vector<32x32xbf16>
    %cst_21 = arith.constant dense<0.000000e+00> : vector<16x32xf32>
    %28 = tpu.matmul %26, %27, %cst_21 {dimension_numbers = #tpu.dot_dimension_numbers<[1], [0], [0], [1], [0, 0, 1, 1], [], []>} : vector<16x32xbf16>, vector<32x32xbf16>, vector<16x32xf32> -> vector<16x32xf32>
    %29 = arith.addf %15, %28 : vector<16x32xf32>
    %c0_22 = arith.constant 0 : index
    %c0_23 = arith.constant 0 : index
    %30 = vector.load %arg9[%c0_22, %c0_23] : memref<1x32xf32, #tpu.memory_space<vmem>>, vector<1x32xf32>
    %31 = vector.broadcast %30 : vector<1x32xf32> to vector<16x32xf32>
    %32 = arith.addf %29, %31 : vector<16x32xf32>
    %33 = arith.truncf %32 : vector<16x32xf32> to vector<16x32xbf16>
    %cst_24 = arith.constant 0.000000e+00 : bf16
    %34 = vector.broadcast %cst_24 : bf16 to vector<16x32xbf16>
    %35 = arith.maximumf %33, %34 : vector<16x32xbf16>
    %c0_25 = arith.constant 0 : index
    %c0_26 = arith.constant 0 : index
    %36 = vector.load %arg10[%c0_25, %c0_26] : memref<32x32xbf16, #tpu.memory_space<vmem>>, vector<32x32xbf16>
    %cst_27 = arith.constant dense<0.000000e+00> : vector<16x32xf32>
    %37 = tpu.matmul %35, %36, %cst_27 {dimension_numbers = #tpu.dot_dimension_numbers<[1], [0], [0], [1], [0, 0, 1, 1], [], []>} : vector<16x32xbf16>, vector<32x32xbf16>, vector<16x32xf32> -> vector<16x32xf32>
    %c0_28 = arith.constant 0 : index
    %c0_29 = arith.constant 0 : index
    %38 = vector.load %arg11[%c0_28, %c0_29] : memref<1x32xf32, #tpu.memory_space<vmem>>, vector<1x32xf32>
    %39 = vector.broadcast %38 : vector<1x32xf32> to vector<16x32xf32>
    %40 = arith.addf %37, %39 : vector<16x32xf32>
    %41 = arith.truncf %40 : vector<16x32xf32> to vector<16x32xbf16>
    %cst_30 = arith.constant 0.000000e+00 : bf16
    %42 = vector.broadcast %cst_30 : bf16 to vector<16x32xbf16>
    %43 = arith.maximumf %41, %42 : vector<16x32xbf16>
    %c0_31 = arith.constant 0 : index
    %c0_32 = arith.constant 0 : index
    %44 = vector.load %arg12[%c0_31, %c0_32] : memref<32x32xbf16, #tpu.memory_space<vmem>>, vector<32x32xbf16>
    %cst_33 = arith.constant dense<0.000000e+00> : vector<16x32xf32>
    %45 = tpu.matmul %43, %44, %cst_33 {dimension_numbers = #tpu.dot_dimension_numbers<[1], [0], [0], [1], [0, 0, 1, 1], [], []>} : vector<16x32xbf16>, vector<32x32xbf16>, vector<16x32xf32> -> vector<16x32xf32>
    %46 = arith.addf %32, %45 : vector<16x32xf32>
    %c0_34 = arith.constant 0 : index
    %c0_35 = arith.constant 0 : index
    %47 = vector.load %arg13[%c0_34, %c0_35] : memref<1x32xf32, #tpu.memory_space<vmem>>, vector<1x32xf32>
    %48 = vector.broadcast %47 : vector<1x32xf32> to vector<16x32xf32>
    %49 = arith.addf %46, %48 : vector<16x32xf32>
    %50 = arith.truncf %49 : vector<16x32xf32> to vector<16x32xbf16>
    %cst_36 = arith.constant 0.000000e+00 : bf16
    %51 = vector.broadcast %cst_36 : bf16 to vector<16x32xbf16>
    %52 = arith.maximumf %50, %51 : vector<16x32xbf16>
    %c0_37 = arith.constant 0 : index
    %c0_38 = arith.constant 0 : index
    %53 = vector.load %arg14[%c0_37, %c0_38] : memref<32x128xbf16, #tpu.memory_space<vmem>>, vector<32x128xbf16>
    %cst_39 = arith.constant dense<0.000000e+00> : vector<16x128xf32>
    %54 = tpu.matmul %52, %53, %cst_39 {dimension_numbers = #tpu.dot_dimension_numbers<[1], [0], [0], [1], [0, 0, 1, 1], [], []>} : vector<16x32xbf16>, vector<32x128xbf16>, vector<16x128xf32> -> vector<16x128xf32>
    %c0_40 = arith.constant 0 : index
    %c0_41 = arith.constant 0 : index
    %55 = vector.load %arg15[%c0_40, %c0_41] : memref<1x128xf32, #tpu.memory_space<vmem>>, vector<1x128xf32>
    %56 = vector.broadcast %55 : vector<1x128xf32> to vector<16x128xf32>
    %57 = arith.addf %54, %56 : vector<16x128xf32>
    %58 = arith.truncf %57 : vector<16x128xf32> to vector<16x128xbf16>
    %c0_42 = arith.constant 0 : index
    %c0_43 = arith.constant 0 : index
    %59 = vector.load %arg16[%c0_42, %c0_43] : memref<16x128xbf16, #tpu.memory_space<vmem>>, vector<16x128xbf16>
    tpu.vector_store %arg16[%c0_42, %c0_43], %58 {strides = array<i32>} : memref<16x128xbf16, #tpu.memory_space<vmem>>, vector<16x128xbf16>,
    return
  }
  func.func @transform_0(%arg0: i32) -> (i32, i32) {
    %c0_i32 = arith.constant 0 : i32
    %c0_i32_0 = arith.constant 0 : i32
    return %arg0, %c0_i32 : i32, i32
  }
  func.func @transform_1(%arg0: i32) -> (i32, i32) {
    %c0_i32 = arith.constant 0 : i32
    %c0_i32_0 = arith.constant 0 : i32
    return %arg0, %c0_i32 : i32, i32
  }
  func.func @transform_2(%arg0: i32) -> (i32, i32) {
    %c0_i32 = arith.constant 0 : i32
    %c0_i32_0 = arith.constant 0 : i32
    %c0_i32_1 = arith.constant 0 : i32
    return %c0_i32, %c0_i32_0 : i32, i32
  }
  func.func @transform_3(%arg0: i32) -> (i32, i32) {
    %c0_i32 = arith.constant 0 : i32
    %c0_i32_0 = arith.constant 0 : i32
    %c0_i32_1 = arith.constant 0 : i32
    return %c0_i32, %c0_i32_0 : i32, i32
  }
  func.func @transform_4(%arg0: i32) -> (i32, i32) {
    %c0_i32 = arith.constant 0 : i32
    %c0_i32_0 = arith.constant 0 : i32
    %c0_i32_1 = arith.constant 0 : i32
    return %c0_i32, %c0_i32_0 : i32, i32
  }
  func.func @transform_5(%arg0: i32) -> (i32, i32) {
    %c0_i32 = arith.constant 0 : i32
    %c0_i32_0 = arith.constant 0 : i32
    %c0_i32_1 = arith.constant 0 : i32
    return %c0_i32, %c0_i32_0 : i32, i32
  }
  func.func @transform_6(%arg0: i32) -> (i32, i32) {
    %c0_i32 = arith.constant 0 : i32
    %c0_i32_0 = arith.constant 0 : i32
    %c0_i32_1 = arith.constant 0 : i32
    return %c0_i32, %c0_i32_0 : i32, i32
  }
  func.func @transform_7(%arg0: i32) -> (i32, i32) {
    %c0_i32 = arith.constant 0 : i32
    %c0_i32_0 = arith.constant 0 : i32
    %c0_i32_1 = arith.constant 0 : i32
    return %c0_i32, %c0_i32_0 : i32, i32
  }
  func.func @transform_8(%arg0: i32) -> (i32, i32) {
    %c0_i32 = arith.constant 0 : i32
    %c0_i32_0 = arith.constant 0 : i32
    %c0_i32_1 = arith.constant 0 : i32
    return %c0_i32, %c0_i32_0 : i32, i32
  }
  func.func @transform_9(%arg0: i32) -> (i32, i32) {
    %c0_i32 = arith.constant 0 : i32
    %c0_i32_0 = arith.constant 0 : i32
    %c0_i32_1 = arith.constant 0 : i32
    return %c0_i32, %c0_i32_0 : i32, i32
  }
  func.func @transform_10(%arg0: i32) -> (i32, i32) {
    %c0_i32 = arith.constant 0 : i32
    %c0_i32_0 = arith.constant 0 : i32
    %c0_i32_1 = arith.constant 0 : i32
    return %c0_i32, %c0_i32_0 : i32, i32
  }
  func.func @transform_11(%arg0: i32) -> (i32, i32) {
    %c0_i32 = arith.constant 0 : i32
    %c0_i32_0 = arith.constant 0 : i32
    %c0_i32_1 = arith.constant 0 : i32
    return %c0_i32, %c0_i32_0 : i32, i32
  }
  func.func @transform_12(%arg0: i32) -> (i32, i32) {
    %c0_i32 = arith.constant 0 : i32
    %c0_i32_0 = arith.constant 0 : i32
    %c0_i32_1 = arith.constant 0 : i32
    return %c0_i32, %c0_i32_0 : i32, i32
  }
  func.func @transform_13(%arg0: i32) -> (i32, i32) {
    %c0_i32 = arith.constant 0 : i32
    %c0_i32_0 = arith.constant 0 : i32
    %c0_i32_1 = arith.constant 0 : i32
    return %c0_i32, %c0_i32_0 : i32, i32
  }
  func.func @transform_14(%arg0: i32) -> (i32, i32) {
    %c0_i32 = arith.constant 0 : i32
    %c0_i32_0 = arith.constant 0 : i32
    %c0_i32_1 = arith.constant 0 : i32
    return %c0_i32, %c0_i32_0 : i32, i32
  }
  func.func @transform_15(%arg0: i32) -> (i32, i32) {
    %c0_i32 = arith.constant 0 : i32
    %c0_i32_0 = arith.constant 0 : i32
    return %arg0, %c0_i32 : i32, i32
  }
}

</mosaic_0001>

<bundles_post_ra>
// kernel: angle_resnet_forward.1
= control target key start
LH: loop header
LB: loop body
LE: loop exit
PB: predicated region body
PF: predicated region fallthrough
CT: control target
= control target key end

     0   :  { %s2026_s0 = inlined_call_operand.vmem [shape: f32[32,32], index: 0, kind: input, shape index: {}]   ;;  %s2027_s1 = inlined_call_operand.vmem [shape: f32[32,32], index: 1, kind: input, shape index: {}]   ;;  %s2028_s2 = inlined_call_operand.vmem [shape: bf16[32,32], index: 2, kind: input, shape index: {}]   ;;  %s2029_s3 = inlined_call_operand.vmem [shape: bf16[32,32], index: 3, kind: input, shape index: {}]   ;;  %s2030_s4 = inlined_call_operand.vmem [shape: f32[1,32], index: 4, kind: input, shape index: {}]   ;;  %s2031_s5 = inlined_call_operand.hbm [shape: bf16[32,32], index: 5, kind: input, shape index: {}]   ;;  %s2032_s6 = inlined_call_operand.vmem [shape: f32[1,32], index: 6, kind: input, shape index: {}]   ;;  %s2033_s7 = inlined_call_operand.hbm [shape: bf16[32,32], index: 7, kind: input, shape index: {}]   ;;  %s2034_s8 = inlined_call_operand.hbm [shape: f32[1,32], index: 8, kind: input, shape index: {}]   ;;  %s2035_s9 = inlined_call_operand.vmem [shape: bf16[32,32], index: 9, kind: input, shape index: {}]   ;;  %s2036_s10 = inlined_call_operand.hbm [shape: f32[1,32], index: 10, kind: input, shape index: {}]   ;;  %s2037_s11 = inlined_call_operand.hbm [shape: bf16[32,32], index: 11, kind: input, shape index: {}]   ;;  %s2038_s12 = inlined_call_operand.hbm [shape: f32[1,32], index: 12, kind: input, shape index: {}]   ;;  %s2039_s13 = inlined_call_operand.vmem [shape: bf16[32,128], index: 13, kind: input, shape index: {}]   ;;  %s2040_s14 = inlined_call_operand.vmem [shape: f32[1,128], index: 14, kind: input, shape index: {}]   ;;  %s2041_s15 = inlined_call_operand.vmem [shape: bf16[32,128], index: 15, kind: output, shape index: {}]  }
   0x1   :  { %2048 = sst [smem:[#allocation16_spill]] %s2032_s6 }
   0x2   :  { %2049 = sst [smem:[#allocation17_spill]] %s2035_s9 }
   0x3   :  { %2050 = sst [smem:[#allocation18_spill]] %s2039_s13 }
   0x4   :  { %2051 = sst [smem:[#allocation19_spill]] %s2040_s14 }
   0x5   :  { %2052 = sst [smem:[#allocation20_spill]] %s2041_s15 }
   0x6   :  { %20 = vsyncpa [#allocation3], 0 }
   0x7   :  { %21 = vsyncpa [#allocation5], 0 }
   0x8   :  { %22 = vsyncpa [#allocation8], 0 }
   0x9   :  { %23 = vsyncpa [#allocation11], 0  ;;  %s1741_s18 = smov 0  }
   0xa LB: > { %s2042_s19 = sadd.s32 4294967295, %s1648_s18   ;;  %p1234_p0 = scmp.ge.s32.totalorder %s1648_s18, 1  ;;  %s1648_s18 = sphi %s1741_s18, %s29_s18  }
   0xb   : > { %p385_p1 = scmp.lt.s32.totalorder %s1648_s18, 3  ;;  %p1751_p2 = scmp.eq.s32.totalorder %s2042_s19, 0 }
   0xc   : > { %s1650_s22 = smov [#allocation4]   ;;  %s1651_s24 = smov [#allocation7]  }
   0xd   : > { %s2053_s20 = scalar_select %p1751_p2, 1, 0 }
   0xe   : > { %p1755_p3 = pnand %p1234_p0, %p385_p1  ;;  %s422_s23 = sshll.u32 %s1650_s22, 4  ;;  %s1759_s23 = int_to_ptr.vmem [resolvable:$true] %s422_s23 }
   0xf   : > { %s450_s25 = sshll.u32 %s1651_s24, 4  ;;  %s1652_s27 = smov [#allocation2]   ;;  %s1763_s25 = int_to_ptr.vmem [resolvable:$true] %s450_s25 }
  0x10   : > { %s2054_s21 = scalar_select %p1755_p3, 1, 0 }
  0x11   : > { %p1394_p4 = pneg %p1755_p3  ;;  %s406_s28 = sshll.u32 %s1652_s27, 4  ;;  %s1771_s28 = int_to_ptr.vmem [resolvable:$true] %s406_s28 }
  0x12   : > { %s1653_s29 = smov [#allocation6]   ;;  %s1458_s22 = scalar_lea.hbm %s2033_s7, 256 }
  0x13   : > { %p1767_p5 = pnand %p1751_p2, %p1394_p4  ;;  %s1773_s30 = sshll.u32 %s1653_s29, 4  ;;  %s437_s30 = int_to_ptr.vmem [resolvable:$true] %s1773_s30 }
  0x14   : > { %p1459_p6 = scmp.ne.s32.totalorder %s2033_s7, %s1458_s22  ;;  %p1465_p10 = scmp.lt.u32.totalorder %s1458_s22, %s2033_s7 }
  0x15   : > { %p1783_p7 = pneg %p1767_p5 }
  0x17   : > { %p1461_p8 = pnand %p1783_p7, %p1459_p6 }
  0x19   : > { %p1462_p9 = pneg %p1461_p8 }
  0x1b   : > { %p1467_p11 = pnand %p1465_p10, %p1462_p9 }
  0x1d   : > { %1470 = shalt.err (!%p1467_p11)
}
  0x1e   : > { %s1471_s19 = scalar_lea.vmem %s1759_s23, 256  ;;  %p1479_p1 = scmp.lt.s32.totalorder %s1759_s23, %s1759_s23 }
  0x1f   : > { %p1472_p12 = scmp.ne.s32.totalorder %s1759_s23, %s1471_s19  ;;  %p1480_p4 = scmp.lt.s32.totalorder %s1471_s19, %s1471_s19 }
  0x21   : > { %p1474_p13 = pnand %p1472_p12, %p1783_p7  ;;  %p1481_p6 = por %p1480_p4, %p1479_p1 }
  0x23   : > { %p1475_p0 = pneg %p1474_p13 }
  0x25   : > { %p1482_p8 = pnand %p1481_p6, %p1475_p0 }
  0x27   : > { %1485 = shalt.err (!%p1482_p8)
}
  0x28   : > { %s1654_s16 = smov 64   ;;  %s1655_s17 = smov 4  }
  0x29   : > { %1400 = dma.hbm_to_vmem [thread:$0]  (!%p1767_p5), %s2033_s7, 256, %s1759_s23, [#allocation5], %s1654_s16, %s1654_s16, %s1655_s17  }
  0x2a   : > { %s1486_s19 = scalar_lea.hbm %s2036_s10, 16 }
  0x2b   : > { %p1487_p9 = scmp.ne.s32.totalorder %s2036_s10, %s1486_s19  ;;  %p1493_p12 = scmp.lt.u32.totalorder %s1486_s19, %s2036_s10 }
  0x2d   : > { %p1489_p10 = pnand %p1487_p9, %p1783_p7 }
  0x2f   : > { %p1490_p11 = pneg %p1489_p10 }
  0x31   : > { %p1495_p13 = pnand %p1493_p12, %p1490_p11 }
  0x33   : > { %1498 = shalt.err (!%p1495_p13)
}
  0x34   : > { %s1499_s23 = scalar_lea.vmem %s1763_s25, 16  ;;  %s1506_s13 = scalar_lea.vmem %s1763_s25, 32 }
  0x35   : > { %p1500_p0 = scmp.ne.s32.totalorder %s1763_s25, %s1499_s23  ;;  %p1507_p6 = scmp.lt.s32.totalorder %s1763_s25, %s1763_s25 }
  0x36   : > { %p1508_p8 = scmp.lt.s32.totalorder %s1506_s13, %s1499_s23 }
  0x37   : > { %p1502_p1 = pnand %p1500_p0, %p1783_p7 }
  0x38   : > { %p1509_p9 = por %p1508_p8, %p1507_p6 }
  0x39   : > { %p1503_p4 = pneg %p1502_p1 }
  0x3b   : > { %p1510_p10 = pnand %p1509_p9, %p1503_p4 }
  0x3d   : > { %1513 = shalt.err (!%p1510_p10)
}
  0x3e   : > { %1406 = dma.hbm_to_vmem [thread:$0]  (!%p1767_p5), %s2036_s10, 16, %s1763_s25, [#allocation8]  }
  0x3f   : > { %s1514_s24 = scalar_lea.hbm %s2031_s5, 256 }
  0x40   : > { %p1515_p11 = scmp.ne.s32.totalorder %s2031_s5, %s1514_s24  ;;  %p1521_p0 = scmp.lt.u32.totalorder %s1514_s24, %s2031_s5 }
  0x42   : > { %p1517_p12 = pnand %p1515_p11, %p1783_p7 }
  0x44   : > { %p1518_p13 = pneg %p1517_p12 }
  0x46   : > { %p1523_p1 = pnand %p1521_p0, %p1518_p13 }
  0x48   : > { %1526 = shalt.err (!%p1523_p1)
}
  0x49   : > { %s1527_s25 = scalar_lea.vmem %s1771_s28, 256  ;;  %p1535_p9 = scmp.lt.s32.totalorder %s1771_s28, %s1771_s28 }
  0x4a   : > { %p1528_p4 = scmp.ne.s32.totalorder %s1771_s28, %s1527_s25  ;;  %p1536_p10 = scmp.lt.s32.totalorder %s1527_s25, %s1527_s25 }
  0x4c   : > { %p1530_p6 = pnand %p1528_p4, %p1783_p7  ;;  %p1537_p11 = por %p1536_p10, %p1535_p9 }
  0x4e   : > { %p1531_p8 = pneg %p1530_p6 }
  0x50   : > { %p1538_p12 = pnand %p1537_p11, %p1531_p8 }
  0x52   : > { %1541 = shalt.err (!%p1538_p12)
}
  0x53   : > { %1397 = dma.hbm_to_vmem [thread:$0]  (!%p1767_p5), %s2031_s5, 256, %s1771_s28, [#allocation3], %s1654_s16, %s1654_s16, %s1655_s17  }
  0x54   : > { %s1542_s22 = scalar_lea.hbm %s2034_s8, 16 }
  0x55   : > { %p1543_p13 = scmp.ne.s32.totalorder %s2034_s8, %s1542_s22  ;;  %p1549_p4 = scmp.lt.u32.totalorder %s1542_s22, %s2034_s8 }
  0x57   : > { %p1545_p0 = pnand %p1543_p13, %p1783_p7 }
  0x59   : > { %p1546_p1 = pneg %p1545_p0 }
  0x5b   : > { %p1551_p6 = pnand %p1549_p4, %p1546_p1 }
  0x5d   : > { %1554 = shalt.err (!%p1551_p6)
}
  0x5e   : > { %s1555_s23 = scalar_lea.vmem %s437_s30, 16  ;;  %s1562_s28 = scalar_lea.vmem %s437_s30, 32 }
  0x5f   : > { %p1556_p8 = scmp.ne.s32.totalorder %s437_s30, %s1555_s23  ;;  %p1563_p11 = scmp.lt.s32.totalorder %s437_s30, %s437_s30 }
  0x60   : > { %p1564_p12 = scmp.lt.s32.totalorder %s1562_s28, %s1555_s23 }
  0x61   : > { %p1558_p9 = pnand %p1556_p8, %p1783_p7 }
  0x62   : > { %p1565_p2 = por %p1564_p12, %p1563_p11 }
  0x63   : > { %p1559_p10 = pneg %p1558_p9 }
  0x65   : > { %p1566_p3 = pnand %p1565_p2, %p1559_p10 }
  0x67   : > { %1569 = shalt.err (!%p1566_p3)
}
  0x68   : > { %1403 = dma.hbm_to_vmem [thread:$0]  (!%p1767_p5), %s2034_s8, 16, %s437_s30, [#allocation5]  }
  0x69   : > { %s1656_s6 = smov [#allocation9]   ;;  %s1657_s14 = smov [#allocation10]  }
  0x6a   : > { %s460_s9 = sshll.u32 %s1656_s6, 4  ;;  %s474_s22 = sshll.u32 %s1657_s14, 4  ;;  %s461_s9 = int_to_ptr.vmem [resolvable:$true] %s460_s9  ;;  %s475_s22 = int_to_ptr.vmem [resolvable:$true] %s474_s22 }
  0x6b   : > { %s1570_s29 = scalar_lea.hbm %s2037_s11, 256 }
  0x6c   : > { %p1571_p2 = scmp.ne.s32.totalorder %s2037_s11, %s1570_s29  ;;  %p1577_p0 = scmp.lt.u32.totalorder %s1570_s29, %s2037_s11 }
  0x6e   : > { %p1573_p3 = pnand %p1571_p2, %p1783_p7 }
  0x70   : > { %p1574_p13 = pneg %p1573_p3 }
  0x72   : > { %p1579_p1 = pnand %p1577_p0, %p1574_p13 }
  0x74   : > { %1582 = shalt.err (!%p1579_p1)
}
  0x75   : > { %s1583_s30 = scalar_lea.vmem %s461_s9, 256  ;;  %p1591_p9 = scmp.lt.s32.totalorder %s461_s9, %s461_s9 }
  0x76   : > { %p1584_p4 = scmp.ne.s32.totalorder %s461_s9, %s1583_s30  ;;  %p1592_p10 = scmp.lt.s32.totalorder %s1583_s30, %s1583_s30 }
  0x78   : > { %p1586_p6 = pnand %p1584_p4, %p1783_p7  ;;  %p1593_p11 = por %p1592_p10, %p1591_p9 }
  0x7a   : > { %p1587_p8 = pneg %p1586_p6 }
  0x7c   : > { %p1594_p12 = pnand %p1593_p11, %p1587_p8 }
  0x7e   : > { %1597 = shalt.err (!%p1594_p12)
}
  0x7f   : > { %1409 = dma.hbm_to_vmem [thread:$0]  (!%p1767_p5), %s2037_s11, 256, %s461_s9, [#allocation8], %s1654_s16, %s1654_s16, %s1655_s17  }
  0x80   : > { %s1598_s27 = scalar_lea.hbm %s2038_s12, 16 }
  0x81   : > { %p1599_p2 = scmp.ne.s32.totalorder %s2038_s12, %s1598_s27  ;;  %p1605_p0 = scmp.lt.u32.totalorder %s1598_s27, %s2038_s12 }
  0x83   : > { %p1601_p3 = pnand %p1599_p2, %p1783_p7 }
  0x85   : > { %p1602_p13 = pneg %p1601_p3 }
  0x87   : > { %p1607_p1 = pnand %p1605_p0, %p1602_p13 }
  0x89   : > { %1610 = shalt.err (!%p1607_p1)
}
  0x8a   : > { %s1611_s25 = scalar_lea.vmem %s475_s22, 16  ;;  %s1618_s16 = scalar_lea.vmem %s475_s22, 32 }
  0x8b   : > { %p1612_p4 = scmp.ne.s32.totalorder %s475_s22, %s1611_s25  ;;  %p1619_p9 = scmp.lt.s32.totalorder %s475_s22, %s475_s22 }
  0x8c   : > { %p1620_p10 = scmp.lt.s32.totalorder %s1618_s16, %s1611_s25 }
  0x8d   : > { %p1614_p6 = pnand %p1612_p4, %p1783_p7 }
  0x8e   : > { %p1621_p11 = por %p1620_p10, %p1619_p9 }
  0x8f   : > { %p1615_p8 = pneg %p1614_p6 }
  0x91   : > { %p1622_p12 = pnand %p1621_p11, %p1615_p8 }
  0x93   : > { %1625 = shalt.err (!%p1622_p12)
}
  0x94   : > { %1412 = dma.hbm_to_vmem [thread:$0]  (!%p1767_p5), %s2038_s12, 16, %s475_s22, [#allocation11]  }
  0x95   : > { %p2057_p2 = scmp.ne.s32.totalorder %s2054_s21, 0 }
  0x96   : > { %p2058_p3 = scmp.ne.s32.totalorder (!%p2057_p2), %s2053_s20, 0 }
  0x97   : > { %511 = sbr.rel (%p2057_p2) target bundleno = 1503 (0x5df), region = 80 }
  0x9e   : > { %1631 = dma.done.wait (%p2058_p3), [#allocation3], 256  }
  0x9f   : > { %1633 = vsyncadd (%p2058_p3), [#allocation3], 4294967040 }
  0xa0   : > { %1635 = dma.done.wait (%p2058_p3), [#allocation5], 272  }
  0xa1   : > { %1637 = vsyncadd (%p2058_p3), [#allocation5], 4294967024 }
  0xa2   : > { %1639 = dma.done.wait (%p2058_p3), [#allocation8], 272  }
  0xa3   : > { %1641 = vsyncadd (%p2058_p3), [#allocation8], 4294967024 }
  0xa4   : > { %1643 = dma.done.wait (%p2058_p3), [#allocation11], 16  }
  0xa5   : > { %1645 = vsyncadd (%p2058_p3), [#allocation11], 4294967280  ;;  %s2059_s15 = sadd.s32 4294967295, %s1648_s18   ;;  %v1658_v0 = vmov 0.0   ;;  %vm1659_vm0 = vmmov 0   ;;  %v1444_v1 = vld [vmem:[%s2029_s3] sm:$0xff]  }
  0xa6   : > { %s1249_s21 = sshll.u32 %s2059_s15, 1  ;;  %1314 = vmatprep.subr.bf16.mxu0 %v1658_v0  ;;  %1322 = vmatprep.subr.bf16.mxu1 %v1658_v0  ;;  %v1445_v2 = vld [vmem:[%s2028_s2] sm:$0xff]   ;;  %v1446_v3 = vld [vmem:[%s2029_s3 + $0x8] sm:$0xff]   ;;  %vm631_vm1 = vcmask 261120   ;;  %v1660_v11 = vmov 0   ;;  %v1450_v31 = vld [vmem:[#allocation4] sm:$0xff]  }
  0xa7   : > { %p585_p5 = scmp.lt.s32.totalorder %s1249_s21, 3  ;;  %1318 = vmatprep.mubr.msk.bf16.mxu0 %vm1659_vm0, %v1658_v0  ;;  %1326 = vmatprep.mubr.msk.bf16.mxu1 %vm1659_vm0, %v1658_v0  ;;  %v1447_v4 = vld [vmem:[%s2028_s2 + $0x8] sm:$0xff]   ;;  %v1448_v14 = vld [vmem:[#allocation2] sm:$0xff]   ;;  %v1451_v32 = vld [vmem:[#allocation4 + $0x8] sm:$0xff]   ;;  %s2060_s26 = sld [smem:[#allocation16_spill]] }
  0xa8   : > { %1315 = vmatpush3.bf16.msra.mxu0 %v1444_v1  ;;  %1323 = vmatpush3.bf16.msra.mxu1 %v1445_v2  ;;  %v1449_v15 = vld [vmem:[#allocation2 + $0x8] sm:$0xff]   ;;  %v1261_v22 = vld [vmem:[%s2030_s4] ss:$0 sm:$0xff]  ;;  %s2061_s13 = sld [smem:[#allocation17_spill]]  ;;  %v1270_v57 = vld [vmem:[#allocation7] ss:$0 sm:$0xff] }
  0xa9   : > { %s2066_s21 = smov (!%p585_p5, %s1249_s21), 3  ;;  %1316 = vmatprep.subr.bf16.mxu0 %v1658_v0  ;;  %1324 = vmatprep.subr.bf16.mxu1 %v1658_v0  ;;  %v1269_v47 = vld [vmem:[#allocation6] ss:$0 sm:$0xff]  ;;  %v1454_v55 = vld [vmem:[#allocation9] sm:$0xff]   ;;  %v1455_v56 = vld [vmem:[#allocation9 + $0x8] sm:$0xff]   ;;  %s2062_s29 = sld [smem:[#allocation18_spill]] }
  0xaa   : > { %s1250_s20 = sshll.u32 %s2066_s21, 3  ;;  %s2063_s16 = sld [smem:[#allocation19_spill]] }
  0xab   : > { %s594_s24 = scalar_lea.vmem %s2027_s1, %s1250_s20  ;;  %s588_s19 = scalar_lea.vmem %s2026_s0, %s1250_s20 }
  0xac   : > { %v607_v5 = vld [vmem:[%s594_s24] sm:$0xff]  ;;  %v608_v6 = vld [vmem:[%s594_s24 + $0x8] sm:$0xff]  ;;  %1317 = vmatpush3.bf16.msra.mxu0 %v1446_v3  ;;  %1325 = vmatpush3.bf16.msra.mxu1 %v1447_v4  ;;  %s1254_s17 = sshll.u32 %s2066_s21, 2  ;;  %s2064_s20 = sld [smem:[#allocation20_spill]] }
  0xad   : > { %v603_v7 = vld [vmem:[%s588_s19] sm:$0xff]  ;;  %v609_v8 = vpack.c.bf16 %v608_v6, %v607_v5  ;;  %v604_v9 = vld [vmem:[%s588_s19 + $0x8] sm:$0xff]  ;;  %1330 = vmatprep.subr.bf16.mxu0 %v1658_v0  ;;  %1338 = vmatprep.subr.bf16.mxu1 %v1658_v0 }
  0xae   : > { %v605_v10 = vpack.c.bf16 %v604_v9, %v603_v7  ;;  %v1262_v33 = vld [vmem:[%s2060_s26] ss:$0 sm:$0xff]  ;;  %v1453_v43 = vld [vmem:[%s2061_s13 + $0x8] sm:$0xff]  }
  0xaf   : > { %v610_v12 = vmax.bf16 %v1660_v11, %v609_v8  ;;  %v1452_v42 = vld [vmem:[%s2061_s13] sm:$0xff]   ;;  %v1457_v4 = vld [vmem:[%s2062_s29 + $0x8] sm:$0xff]   ;;  %v1277_v8 = vld [vmem:[#allocation10] ss:$0 sm:$0xff] }
  0xb0   : > { %v606_v13 = vmax.bf16 %v1660_v11, %v605_v10  ;;  %v1456_v3 = vld [vmem:[%s2062_s29] sm:$0xff]  }
  0xb1   : > { %1319 = vmatmul.mubr.msk.bf16.vlgmr.msra.gmra.mrb[0].mxu0 %vm631_vm1, %v610_v12 }
  0xb2   : > { %1327 = vmatmul.mubr.msk.bf16.vlgmr.msra.gmra.mrb[0].mxu1 %vm631_vm1, %v606_v13  ;;  %1334 = vmatprep.mubr.msk.bf16.mxu0 %vm1659_vm0, %v1658_v0  ;;  %s600_s26 = scalar_lea.vmem %s2064_s20, %s1254_s17 }
  0xb3   : > { %1342 = vmatprep.mubr.msk.bf16.mxu1 %vm1659_vm0, %v1658_v0  ;;  %1331 = vmatpush3.bf16.msra.mxu0 %v1448_v14 }
  0xb4   : > { %1332 = vmatprep.subr.bf16.mxu0 %v1658_v0  ;;  %1339 = vmatpush3.bf16.msra.mxu1 %v1450_v31 }
  0xb5   : > { %1340 = vmatprep.subr.bf16.mxu1 %v1658_v0 }
  0xb7   : > { %1333 = vmatpush3.bf16.msra.mxu0 %v1449_v15 }
  0xb8   : > { %1346 = vmatprep.subr.bf16.mxu0 %v1658_v0  ;;  %1341 = vmatpush3.bf16.msra.mxu1 %v1451_v32 }
  0xb9   : > { %1354 = vmatprep.subr.bf16.mxu1 %v1658_v0 }
 0x184   : > { %v669_v16 = vpop.f32.mrb[0].mxu0 }
 0x185   : > { %v725_v17 = vpop.f32.mrb[0].mxu1  ;;  %v1320_v18 = vpop.f32.mrb[1].mxu0 }
 0x186   : > { %v726_v19 = vadd.f32 %v725_v17, %v669_v16  ;;  %v1328_v20 = vpop.f32.mrb[1].mxu1  ;;  %v672_v21 = vpop.f32.mrb[2].mxu0 }
 0x187   : > { %v728_v23 = vpop.f32.mrb[2].mxu1  ;;  %v1321_v24 = vpop.f32.mrb[3].mxu0 }
 0x188   : > { %v729_v25 = vadd.f32 %v728_v23, %v672_v21  ;;  %v1329_v26 = vpop.f32.mrb[3].mxu1  ;;  %v739_v27 = vadd.f32 %v1261_v22, %v726_v19 }
 0x18a   : > { %v740_v28 = vadd.f32 %v1261_v22, %v729_v25 }
 0x18c   : > { %v741_v29 = vpack.c.bf16 %v740_v28, %v739_v27 }
 0x18e   : > { %v742_v30 = vmax.bf16 %v1660_v11, %v741_v29 }
 0x190   : > { %1335 = vmatmul.mubr.msk.bf16.vlgmr.msra.gmra.mrb[4].mxu0 %vm631_vm1, %v742_v30 }
 0x191   : > { %1350 = vmatprep.mubr.msk.bf16.mxu0 %vm1659_vm0, %v1658_v0  ;;  %1347 = vmatpush3.bf16.msra.mxu0 %v1452_v42 }
 0x192   : > { %1348 = vmatprep.subr.bf16.mxu0 %v1658_v0 }
 0x195   : > { %1349 = vmatpush3.bf16.msra.mxu0 %v1453_v43 }
 0x196   : > { %1362 = vmatprep.subr.bf16.mxu0 %v1658_v0 }
 0x263   : > { %v803_v34 = vpop.f32.mrb[4].mxu0 }
 0x264   : > { %v1336_v35 = vpop.f32.mrb[5].mxu0  ;;  %v804_v37 = vadd.f32 %v1262_v33, %v803_v34 }
 0x265   : > { %v806_v36 = vpop.f32.mrb[6].mxu0 }
 0x266   : > { %v807_v38 = vadd.f32 %v1262_v33, %v806_v36  ;;  %v1337_v39 = vpop.f32.mrb[7].mxu0 }
 0x268   : > { %v810_v40 = vpack.c.bf16 %v807_v38, %v804_v37 }
 0x26a   : > { %v811_v41 = vmax.bf16 %v1660_v11, %v810_v40 }
 0x26c   : > { %1343 = vmatmul.mubr.msk.bf16.vlgmr.msra.gmra.mrb[4].mxu1 %vm631_vm1, %v811_v41 }
 0x26d   : > { %1358 = vmatprep.mubr.msk.bf16.mxu1 %vm1659_vm0, %v1658_v0  ;;  %1355 = vmatpush3.bf16.msra.mxu1 %v1454_v55 }
 0x26e   : > { %1356 = vmatprep.subr.bf16.mxu1 %v1658_v0 }
 0x271   : > { %1357 = vmatpush3.bf16.msra.mxu1 %v1455_v56 }
 0x33f   : > { %v865_v44 = vpop.f32.mrb[4].mxu1 }
 0x340   : > { %v872_v45 = vadd.f32 %v865_v44, %v739_v27  ;;  %v1344_v46 = vpop.f32.mrb[5].mxu1 }
 0x341   : > { %v868_v48 = vpop.f32.mrb[6].mxu1 }
 0x342   : > { %v873_v49 = vadd.f32 %v868_v48, %v740_v28  ;;  %v1345_v50 = vpop.f32.mrb[7].mxu1  ;;  %v881_v51 = vadd.f32 %v1269_v47, %v872_v45 }
 0x344   : > { %v882_v52 = vadd.f32 %v1269_v47, %v873_v49 }
 0x346   : > { %v883_v53 = vpack.c.bf16 %v882_v52, %v881_v51 }
 0x348   : > { %v884_v54 = vmax.bf16 %v1660_v11, %v883_v53 }
 0x34a   : > { %1351 = vmatmul.mubr.msk.bf16.vlgmr.msra.gmra.mrb[8].mxu0 %vm631_vm1, %v884_v54 }
 0x34b   : > { %1366 = vmatprep.mubr.msk.bf16.mxu0 %vm1659_vm0, %v1658_v0  ;;  %1363 = vmatpush3.bf16.msra.mxu0 %v1456_v3 }
 0x34c   : > { %1364 = vmatprep.subr.bf16.mxu0 %v1658_v0  ;;  %v1278_v0 = vld [vmem:[%s2063_s16] ss:$0 sm:$0xff] }
 0x34f   : > { %1365 = vmatpush3.bf16.msra.mxu0 %v1457_v4 }
 0x41d   : > { %v945_v58 = vpop.f32.mrb[8].mxu0 }
 0x41e   : > { %v1352_v59 = vpop.f32.mrb[9].mxu0  ;;  %v946_v61 = vadd.f32 %v1270_v57, %v945_v58 }
 0x41f   : > { %v948_v60 = vpop.f32.mrb[10].mxu0 }
 0x420   : > { %v949_v62 = vadd.f32 %v1270_v57, %v948_v60  ;;  %v1353_v63 = vpop.f32.mrb[11].mxu0 }
 0x422   : > { %v952_v1 = vpack.c.bf16 %v949_v62, %v946_v61 }
 0x424   : > { %v953_v2 = vmax.bf16 %v1660_v11, %v952_v1 }
 0x426   : > { %1359 = vmatmul.mubr.msk.bf16.vlgmr.msra.gmra.mrb[8].mxu1 %vm631_vm1, %v953_v2 }
 0x4f9   : > { %v1007_v5 = vpop.f32.mrb[8].mxu1 }
 0x4fa   : > { %v1014_v6 = vadd.f32 %v1007_v5, %v881_v51  ;;  %v1360_v7 = vpop.f32.mrb[9].mxu1 }
 0x4fb   : > { %v1010_v9 = vpop.f32.mrb[10].mxu1 }
 0x4fc   : > { %v1015_v10 = vadd.f32 %v1010_v9, %v882_v52  ;;  %v1361_v12 = vpop.f32.mrb[11].mxu1  ;;  %v1023_v13 = vadd.f32 %v1277_v8, %v1014_v6 }
 0x4fe   : > { %v1024_v14 = vadd.f32 %v1277_v8, %v1015_v10 }
 0x500   : > { %v1025_v15 = vpack.c.bf16 %v1024_v14, %v1023_v13 }
 0x502   : > { %v1026_v16 = vmax.bf16 %v1660_v11, %v1025_v15 }
 0x504   : > { %1367 = vmatmul.mubr.msk.bf16.vlgmr.msra.gmra.mrb[12].mxu0 %vm631_vm1, %v1026_v16 }
 0x5d7   : > { %v1087_v17 = vpop.f32.mrb[12].mxu0 }
 0x5d8   : > { %v1368_v18 = vpop.f32.mrb[13].mxu0  ;;  %v1088_v20 = vadd.f32 %v1278_v0, %v1087_v17 }
 0x5d9   : > { %v1090_v19 = vpop.f32.mrb[14].mxu0 }
 0x5da   : > { %v1091_v21 = vadd.f32 %v1278_v0, %v1090_v19  ;;  %v1369_v22 = vpop.f32.mrb[15].mxu0 }
 0x5dc   : > { %v1291_v23 = vpack.c.bf16 %v1091_v21, %v1088_v20 }
 0x5de   : > { %1292 = vst [vmem:[%s600_s26] sm:$0xff] %v1291_v23  }
 0x5df PF: > { %s29_s18 = sadd.s32 1, %s1648_s18  }
 0x5e0   : > { %p26_p7 = scmp.ge.s32.totalorder %s29_s18, 4  }
 0x5e2   :  { %28 = sbr.rel (!%p26_p7) target bundleno = 10 (0xa), region = 138 }
 0x5e9   :  { %1126 = vsyncpa [#allocation3], 1 }
 0x5ea   :  { %1128 = vsyncpa [#allocation3 + $0x1], 1 }
 0x5eb   :  { %1129 = vsyncpa [#allocation5], 1 }
 0x5ec   :  { %1130 = vsyncpa [#allocation8], 1 }
 0x5ed   :  { %1131 = vsyncpa [#allocation11], 1 }

</bundles_post_ra>
